<compile_context>
chip_gen: v7x
topology: tpu7x:2x2x1
jax: 0.10.0
libtpu: 0.0.40
codegen_flags: <defaults>
</compile_context>

<pallas_src>
import jax
import jax.numpy as jnp
from jax import lax
from jax.experimental import pallas as pl
from jax.experimental.pallas import tpu as pltpu

_LANE = 128
_SUBLANE = 8


def _round_up(n, m):
    return ((n + m - 1) // m) * m


def prepare_udn_params(wh, bh, wo, bo):
    """One-time parameter prep. Hoist out of the step hot path and cache.

    Fuses the per-depth output head and hidden layer (they share the same LHS)
    into a single (H, Cpad+H) matrix, pads the class axis to a full 128-lane
    tile, bakes the padded-lane mask into the bias (-1e30), and casts the fused
    weights to bf16 for the MXU.
    """
    D, H, _ = wh.shape
    Dp1, _, C = wo.shape
    Cpad = _round_up(C, _LANE)

    # Output-head weights, class axis zero-padded to Cpad lanes (zeros keep the
    # padded-lane logits equal to the bias).
    wo_p = jnp.pad(wo.astype(jnp.float32), ((0, 0), (0, 0), (0, Cpad - C)))
    # Hidden weights; the last depth has no hidden layer -> zero block (the H
    # wasted output columns on the last head are negligible and keep the
    # per-depth shapes uniform).
    wh_ext = jnp.concatenate(
        [wh.astype(jnp.float32), jnp.zeros((1, H, H), jnp.float32)], axis=0)
    wf = jnp.concatenate([wo_p, wh_ext], axis=-1).astype(jnp.bfloat16)

    # Bias: padded class lanes carry -1e30 (not -inf, to avoid NaN paths), so
    # the kernel needs no iota/where masking before the softmax.
    bo_p = jnp.pad(bo.astype(jnp.float32), ((0, 0), (0, 0), (0, Cpad - C)))
    pad_lane = jnp.arange(Cpad) >= C
    bo_p = jnp.where(pad_lane, jnp.float32(-1e30), bo_p)
    bh_ext = jnp.concatenate(
        [bh.astype(jnp.float32), jnp.zeros((1, 1, H), jnp.float32)], axis=0)
    bf = jnp.concatenate([bo_p, bh_ext], axis=-1)  # (Dp1, 1, Cpad+H) f32

    return wf, bf, (Dp1, H, C, Cpad)


def _make_udn_kernel(Dp1, Cpad):
    """Kernel for one batch tile; depth loop is a static unroll (Dp1 small)."""

    def kernel(probs_ref, x_ref, wf_ref, bf_ref, global_ref, per_layer_ref):
        # Single bf16 cast of the state per depth (shared by the fused matmul).
        state_bf = x_ref[...].astype(jnp.bfloat16)            # (TB, H)
        glob = jnp.zeros(global_ref.shape, jnp.float32)       # (TB, Cpad)

        # TODO(synk): for large Dp1 switch to lax.fori_loop with dynamic
        # wf_ref[i]/bf_ref[i] indexing (or a depth grid axis marked
        # "arbitrary") to bound live ranges / code size.
        for i in range(Dp1):
            # One MXU push per depth: [logits | next_hidden] in f32.
            fused = jnp.dot(state_bf, wf_ref[i],
                            preferred_element_type=jnp.float32) + bf_ref[i]
            logits = fused[:, :Cpad]      # tile-aligned slice (Cpad % 128 == 0)

            m = jnp.max(logits, axis=-1, keepdims=True)
            e = jnp.exp(logits - m)
            denom = jnp.sum(e, axis=-1, keepdims=True)
            preds = e * (1.0 / denom)     # exact column reciprocal: rows sum to 1

            per_layer_ref[i] = preds.astype(per_layer_ref.dtype)   # lane-dense
            glob = glob + probs_ref[i] * preds                     # q(L=i) scalar

            if i + 1 < Dp1:
                state_bf = jnp.maximum(fused[:, Cpad:], 0.0).astype(jnp.bfloat16)

        global_ref[...] = glob.astype(global_ref.dtype)

    return kernel


def udn_forward_pallas(x, probs, prepared, *, block_batch=256,
                       per_layer_dtype=jnp.bfloat16):
    """UDN forward hot path. Returns (global_preds (B,C), per_layer (Dp1,B,C))."""
    wf, bf, (Dp1, H, C, Cpad) = prepared
    B = x.shape[0]
    F = Cpad + H

    # Batch tile: large enough to fill the MXU rows when B allows (256 on
    # v6e/v7x; still fine on v5e), clamped for tiny batches.
    TB = min(_round_up(block_batch, _SUBLANE), _round_up(B, _SUBLANE))
    Bpad = _round_up(B, TB)
    n_tiles = Bpad // TB

    x_p = jnp.pad(x.astype(jnp.float32), ((0, Bpad - B), (0, 0)))
    probs_f = probs.astype(jnp.float32)

    # VMEM plan: resident weight stacks + double-buffered x / output tiles,
    # with headroom, capped at v7x's 64 MiB physical VMEM.
    per_bytes = jnp.dtype(per_layer_dtype).itemsize
    vmem_est = (Dp1 * H * F * 2 + Dp1 * F * 4
                + 2 * TB * H * 4 + 2 * TB * Cpad * 4
                + 2 * Dp1 * TB * Cpad * per_bytes)
    vmem_limit = int(min(max(2 * vmem_est + (2 << 20), 16 << 20), 64 << 20))

    kernel = _make_udn_kernel(Dp1, Cpad)

    glob_p, per_layer_p = pl.pallas_call(
        kernel,
        out_shape=(jax.ShapeDtypeStruct((Bpad, Cpad), jnp.float32),
                   jax.ShapeDtypeStruct((Dp1, Bpad, Cpad), per_layer_dtype)),
        grid=(n_tiles,),
        in_specs=[
            pl.BlockSpec(memory_space=pltpu.MemorySpace.SMEM),       # probs (whole)
            pl.BlockSpec((TB, H), lambda b: (b, 0)),                 # x batch tile
            pl.BlockSpec((Dp1, H, F), lambda b: (0, 0, 0)),          # fused W, resident
            pl.BlockSpec((Dp1, 1, F), lambda b: (0, 0, 0)),          # fused b, resident
        ],
        out_specs=(
            pl.BlockSpec((TB, Cpad), lambda b: (b, 0)),              # global preds
            pl.BlockSpec((Dp1, TB, Cpad), lambda b: (0, b, 0)),      # per-layer preds
        ),
        compiler_params=pltpu.CompilerParams(
            dimension_semantics=("parallel",),     # megacore shard on v7x
            vmem_limit_bytes=vmem_limit),
    )(probs_f, x_p, wf, bf)

    # Strip padding.
    return glob_p[:B, :C], per_layer_p[:, :B, :C]


def udn_forward(x, probs, wh, bh, wo, bo, theta_prior_scale=10.0, prepared=None):
    """Full forward() dict (y=None path). Heavy compute in Pallas, scalar
    bookkeeping (prior/entropy terms) in plain JAX glue."""
    D = wh.shape[0]
    if prepared is None:
        prepared = prepare_udn_params(wh, bh, wo, bo)

    global_preds, per_layer = udn_forward_pallas(x, probs, prepared)

    # entropy of q(L) (torch.distributions.Categorical semantics: 0*log0 -> 0)
    entropy_qL = -jnp.sum(
        jnp.where(probs > 0, probs * jnp.log(jnp.clip(probs, 1e-30)), 0.0))

    # prior over L for CategoricalDUN: Categorical([0] + [1/D]*D); eps-clamped
    # log matches torch's clamp_probs inside probs_to_logits.
    prior_L_probs = jnp.concatenate([jnp.zeros(1), jnp.full((D,), 1.0 / D)])
    logp_L = jnp.log(jnp.clip(prior_L_probs, 1.1920929e-07))

    # Gaussian prior terms on theta (computed on the original f32 parameters).
    s2 = 2.0 * theta_prior_scale ** 2
    logp_theta_hidden = jnp.array(
        [0.0] + [-(jnp.sum(wh[l] ** 2) + jnp.sum(bh[l] ** 2)) / s2 for l in range(D)])
    logp_theta_hidden_cum = jnp.cumsum(logp_theta_hidden)
    logp_theta_output = jnp.array(
        [-(jnp.sum(wo[i] ** 2) + jnp.sum(bo[i] ** 2)) / s2 for i in range(D + 1)])

    logp_y = jnp.zeros(D + 1)  # y=None => logpy = 0 at every layer
    losses = []
    for i in range(D + 1):
        a = probs[i]
        logp_full = logp_y[i] + logp_theta_hidden_cum[i] + logp_theta_output[i] + logp_L[i]
        logp_detached = logp_y[i] + logp_theta_output[i]
        # TODO(synk): PyTorch detach/stop-gradient semantics of the a==0 branch
        # are not reproduced here (forward values only).
        losses.append(jnp.where(a > 0, a * logp_full, logp_detached))

    # TODO(synk): dynamic layer creation (update_depth) / optimizer param-group
    # mutation has no kernel equivalent; depth is fixed at trace time here.

    return dict(predictions_global=global_preds,
                predictions_per_layer=per_layer,
                losses=losses,
                entropy_qL=entropy_qL,
                logp_L_per_layer=logp_L,
                logp_theta_per_layer=logp_theta_hidden_cum + logp_theta_output,
                logp_y_per_layer=logp_y)


def _reference_forward(x, probs, wh, bh, wo, bo):
    Dp1 = probs.shape[0]
    state = x.astype(jnp.float32)
    per_layer = []
    glob = jnp.zeros((x.shape[0], wo.shape[-1]), jnp.float32)
    for i in range(Dp1):
        if i > 0:
            state = jnp.maximum(state @ wh[i - 1] + bh[i - 1][0], 0.0)
        logits = state @ wo[i] + bo[i][0]
        p = jax.nn.softmax(logits, axis=-1)
        per_layer.append(p)
        glob = glob + probs[i] * p
    return glob, jnp.stack(per_layer)


if __name__ == "__main__":
    # Small shapes consistent with the module: batch=8, in_dim=hidden=32,
    # out_dim=8 classes, CategoricalDUN(max_depth=3) => 3 hidden, 4 output heads.
    B, H, C, D = 8, 32, 8, 3

    key = jax.random.PRNGKey(0)
    kx, kwh, kbh, kwo, kbo = jax.random.split(key, 5)
    x = jax.random.normal(kx, (B, H), dtype=jnp.float32)
    wh = 0.1 * jax.random.normal(kwh, (D, H, H), dtype=jnp.float32)
    bh = 0.1 * jax.random.normal(kbh, (D, 1, H), dtype=jnp.float32)
    wo = 0.1 * jax.random.normal(kwo, (D + 1, H, C), dtype=jnp.float32)
    bo = 0.1 * jax.random.normal(kbo, (D + 1, 1, C), dtype=jnp.float32)

    # CategoricalDUN probability vector: [0, softmax(ones(D))...] = [0, 1/D, ...]
    probs = jnp.concatenate([jnp.zeros(1, jnp.float32),
                             jax.nn.softmax(jnp.ones(D, jnp.float32))])

    # One-time parameter prep (cache across steps in real use; hoisted out of
    # the per-forward hot path).
    prepared = prepare_udn_params(wh, bh, wo, bo)

    out = udn_forward(x, probs, wh, bh, wo, bo, prepared=prepared)
    glob = jax.block_until_ready(out["predictions_global"])
    per_layer = jax.block_until_ready(out["predictions_per_layer"])

    ref_glob, ref_per_layer = _reference_forward(x, probs, wh, bh, wo, bo)
    assert glob.shape == (B, C) and per_layer.shape == (D + 1, B, C)
    # Tolerance accounts for bf16 weights (f32 accumulate) and the bf16
    # per-layer output dtype.
    assert jnp.allclose(glob, ref_glob, rtol=2e-2, atol=2e-2), "global preds mismatch"
    assert jnp.allclose(per_layer.astype(jnp.float32), ref_per_layer,
                        rtol=3e-2, atol=2e-2), "per-layer mismatch"

    print("KERNEL_OK")
</pallas_src>

<mosaic_0001>
module attributes {stable_mosaic.version = 11 : i64} {
  func.func @kernel(%arg0: i32, %arg1: memref<4xf32, #tpu.memory_space<smem>>, %arg2: memref<8x32xf32, #tpu.memory_space<vmem>>, %arg3: memref<4x32x160xbf16, #tpu.memory_space<vmem>>, %arg4: memref<4x1x160xf32, #tpu.memory_space<vmem>>, %arg5: memref<8x128xf32, #tpu.memory_space<vmem>>, %arg6: memref<4x8x128xbf16, #tpu.memory_space<vmem>>) attributes {dimension_semantics = [#tpu.dimension_semantics<parallel>], iteration_bounds = array<i64: 1>, scalar_prefetch = 0 : i64, scratch_operands = 0 : i64, tpu.core_type = #tpu.core_type<tc>, window_params = [{transform_indices = @transform_0, window_bounds = array<i64: 4>}, {transform_indices = @transform_1, window_bounds = array<i64: 8, 32>}, {pipeline_mode = #tpu.pipeline_mode<synchronous>, transform_indices = @transform_2, window_bounds = array<i64: 4, 32, 160>}, {pipeline_mode = #tpu.pipeline_mode<synchronous>, transform_indices = @transform_3, window_bounds = array<i64: 4, 1, 160>}, {transform_indices = @transform_4, window_bounds = array<i64: 8, 128>}, {transform_indices = @transform_5, window_bounds = array<i64: 4, 8, 128>}]} {
    %c0 = arith.constant 0 : index
    %c0_0 = arith.constant 0 : index
    %0 = vector.load %arg2[%c0, %c0_0] : memref<8x32xf32, #tpu.memory_space<vmem>>, vector<8x32xf32>
    %1 = arith.truncf %0 : vector<8x32xf32> to vector<8x32xbf16>
    %cst = arith.constant 0.000000e+00 : f32
    %2 = vector.broadcast %cst : f32 to vector<8x128xf32>
    %c0_1 = arith.constant 0 : index
    %c0_2 = arith.constant 0 : index
    %c0_3 = arith.constant 0 : index
    %3 = vector.load %arg3[%c0_1, %c0_2, %c0_3] : memref<4x32x160xbf16, #tpu.memory_space<vmem>>, vector<1x32x160xbf16>
    %4 = vector.shape_cast %3 : vector<1x32x160xbf16> to vector<32x160xbf16>
    %cst_4 = arith.constant dense<0.000000e+00> : vector<8x160xf32>
    %5 = tpu.matmul %1, %4, %cst_4 {dimension_numbers = #tpu.dot_dimension_numbers<[1], [0], [0], [1], [0, 0, 1, 1], [], []>} : vector<8x32xbf16>, vector<32x160xbf16>, vector<8x160xf32> -> vector<8x160xf32>
    %c0_5 = arith.constant 0 : index
    %c0_6 = arith.constant 0 : index
    %c0_7 = arith.constant 0 : index
    %6 = vector.load %arg4[%c0_5, %c0_6, %c0_7] : memref<4x1x160xf32, #tpu.memory_space<vmem>>, vector<1x1x160xf32>
    %7 = vector.shape_cast %6 : vector<1x1x160xf32> to vector<1x160xf32>
    %8 = vector.broadcast %7 : vector<1x160xf32> to vector<8x160xf32>
    %9 = arith.addf %5, %8 : vector<8x160xf32>
    %10 = vector.extract_strided_slice %9 {offsets = [0, 0], sizes = [8, 128], strides = [1, 1]} : vector<8x160xf32> to vector<8x128xf32>
    %cst_8 = arith.constant dense<0xFF800000> : vector<8xf32>
    %11 = vector.multi_reduction <maximumf>, %10, %cst_8 [1] : vector<8x128xf32> to vector<8xf32>
    %12 = vector.shape_cast %11 : vector<8xf32> to vector<8x1xf32>
    %13 = vector.broadcast %12 : vector<8x1xf32> to vector<8x128xf32>
    %14 = arith.subf %10, %13 : vector<8x128xf32>
    %15 = math.exp %14 : vector<8x128xf32>
    %cst_9 = arith.constant dense<0.000000e+00> : vector<8xf32>
    %16 = vector.multi_reduction <add>, %15, %cst_9 [1] : vector<8x128xf32> to vector<8xf32>
    %17 = vector.shape_cast %16 : vector<8xf32> to vector<8x1xf32>
    %cst_10 = arith.constant 1.000000e+00 : f32
    %18 = vector.broadcast %cst_10 : f32 to vector<8x1xf32>
    %19 = arith.divf %18, %17 : vector<8x1xf32>
    %20 = vector.broadcast %19 : vector<8x1xf32> to vector<8x128xf32>
    %21 = arith.mulf %15, %20 : vector<8x128xf32>
    %22 = arith.truncf %21 : vector<8x128xf32> to vector<8x128xbf16>
    %c0_11 = arith.constant 0 : index
    %c0_12 = arith.constant 0 : index
    %c0_13 = arith.constant 0 : index
    %23 = vector.load %arg6[%c0_11, %c0_12, %c0_13] : memref<4x8x128xbf16, #tpu.memory_space<vmem>>, vector<1x8x128xbf16>
    %24 = vector.shape_cast %23 : vector<1x8x128xbf16> to vector<8x128xbf16>
    %25 = vector.shape_cast %22 : vector<8x128xbf16> to vector<1x8x128xbf16>
    tpu.vector_store %arg6[%c0_11, %c0_12, %c0_13], %25 {strides = array<i32>} : memref<4x8x128xbf16, #tpu.memory_space<vmem>>, vector<1x8x128xbf16>,
    %c0_14 = arith.constant 0 : index
    %26 = memref.load %arg1[%c0_14] : memref<4xf32, #tpu.memory_space<smem>>
    %27 = vector.broadcast %26 : f32 to vector<8x128xf32>
    %28 = arith.mulf %27, %21 : vector<8x128xf32>
    %29 = arith.addf %2, %28 : vector<8x128xf32>
    %30 = vector.extract_strided_slice %9 {offsets = [0, 128], sizes = [8, 32], strides = [1, 1]} : vector<8x160xf32> to vector<8x32xf32>
    %cst_15 = arith.constant 0.000000e+00 : f32
    %31 = vector.broadcast %cst_15 : f32 to vector<8x32xf32>
    %32 = arith.maximumf %30, %31 : vector<8x32xf32>
    %33 = arith.truncf %32 : vector<8x32xf32> to vector<8x32xbf16>
    %c1 = arith.constant 1 : index
    %c0_16 = arith.constant 0 : index
    %c0_17 = arith.constant 0 : index
    %34 = vector.load %arg3[%c1, %c0_16, %c0_17] : memref<4x32x160xbf16, #tpu.memory_space<vmem>>, vector<1x32x160xbf16>
    %35 = vector.shape_cast %34 : vector<1x32x160xbf16> to vector<32x160xbf16>
    %cst_18 = arith.constant dense<0.000000e+00> : vector<8x160xf32>
    %36 = tpu.matmul %33, %35, %cst_18 {dimension_numbers = #tpu.dot_dimension_numbers<[1], [0], [0], [1], [0, 0, 1, 1], [], []>} : vector<8x32xbf16>, vector<32x160xbf16>, vector<8x160xf32> -> vector<8x160xf32>
    %c1_19 = arith.constant 1 : index
    %c0_20 = arith.constant 0 : index
    %c0_21 = arith.constant 0 : index
    %37 = vector.load %arg4[%c1_19, %c0_20, %c0_21] : memref<4x1x160xf32, #tpu.memory_space<vmem>>, vector<1x1x160xf32>
    %38 = vector.shape_cast %37 : vector<1x1x160xf32> to vector<1x160xf32>
    %39 = vector.broadcast %38 : vector<1x160xf32> to vector<8x160xf32>
    %40 = arith.addf %36, %39 : vector<8x160xf32>
    %41 = vector.extract_strided_slice %40 {offsets = [0, 0], sizes = [8, 128], strides = [1, 1]} : vector<8x160xf32> to vector<8x128xf32>
    %cst_22 = arith.constant dense<0xFF800000> : vector<8xf32>
    %42 = vector.multi_reduction <maximumf>, %41, %cst_22 [1] : vector<8x128xf32> to vector<8xf32>
    %43 = vector.shape_cast %42 : vector<8xf32> to vector<8x1xf32>
    %44 = vector.broadcast %43 : vector<8x1xf32> to vector<8x128xf32>
    %45 = arith.subf %41, %44 : vector<8x128xf32>
    %46 = math.exp %45 : vector<8x128xf32>
    %cst_23 = arith.constant dense<0.000000e+00> : vector<8xf32>
    %47 = vector.multi_reduction <add>, %46, %cst_23 [1] : vector<8x128xf32> to vector<8xf32>
    %48 = vector.shape_cast %47 : vector<8xf32> to vector<8x1xf32>
    %cst_24 = arith.constant 1.000000e+00 : f32
    %49 = vector.broadcast %cst_24 : f32 to vector<8x1xf32>
    %50 = arith.divf %49, %48 : vector<8x1xf32>
    %51 = vector.broadcast %50 : vector<8x1xf32> to vector<8x128xf32>
    %52 = arith.mulf %46, %51 : vector<8x128xf32>
    %53 = arith.truncf %52 : vector<8x128xf32> to vector<8x128xbf16>
    %c1_25 = arith.constant 1 : index
    %c0_26 = arith.constant 0 : index
    %c0_27 = arith.constant 0 : index
    %54 = vector.load %arg6[%c1_25, %c0_26, %c0_27] : memref<4x8x128xbf16, #tpu.memory_space<vmem>>, vector<1x8x128xbf16>
    %55 = vector.shape_cast %54 : vector<1x8x128xbf16> to vector<8x128xbf16>
    %56 = vector.shape_cast %53 : vector<8x128xbf16> to vector<1x8x128xbf16>
    tpu.vector_store %arg6[%c1_25, %c0_26, %c0_27], %56 {strides = array<i32>} : memref<4x8x128xbf16, #tpu.memory_space<vmem>>, vector<1x8x128xbf16>,
    %c1_28 = arith.constant 1 : index
    %57 = memref.load %arg1[%c1_28] : memref<4xf32, #tpu.memory_space<smem>>
    %58 = vector.broadcast %57 : f32 to vector<8x128xf32>
    %59 = arith.mulf %58, %52 : vector<8x128xf32>
    %60 = arith.addf %29, %59 : vector<8x128xf32>
    %61 = vector.extract_strided_slice %40 {offsets = [0, 128], sizes = [8, 32], strides = [1, 1]} : vector<8x160xf32> to vector<8x32xf32>
    %cst_29 = arith.constant 0.000000e+00 : f32
    %62 = vector.broadcast %cst_29 : f32 to vector<8x32xf32>
    %63 = arith.maximumf %61, %62 : vector<8x32xf32>
    %64 = arith.truncf %63 : vector<8x32xf32> to vector<8x32xbf16>
    %c2 = arith.constant 2 : index
    %c0_30 = arith.constant 0 : index
    %c0_31 = arith.constant 0 : index
    %65 = vector.load %arg3[%c2, %c0_30, %c0_31] : memref<4x32x160xbf16, #tpu.memory_space<vmem>>, vector<1x32x160xbf16>
    %66 = vector.shape_cast %65 : vector<1x32x160xbf16> to vector<32x160xbf16>
    %cst_32 = arith.constant dense<0.000000e+00> : vector<8x160xf32>
    %67 = tpu.matmul %64, %66, %cst_32 {dimension_numbers = #tpu.dot_dimension_numbers<[1], [0], [0], [1], [0, 0, 1, 1], [], []>} : vector<8x32xbf16>, vector<32x160xbf16>, vector<8x160xf32> -> vector<8x160xf32>
    %c2_33 = arith.constant 2 : index
    %c0_34 = arith.constant 0 : index
    %c0_35 = arith.constant 0 : index
    %68 = vector.load %arg4[%c2_33, %c0_34, %c0_35] : memref<4x1x160xf32, #tpu.memory_space<vmem>>, vector<1x1x160xf32>
    %69 = vector.shape_cast %68 : vector<1x1x160xf32> to vector<1x160xf32>
    %70 = vector.broadcast %69 : vector<1x160xf32> to vector<8x160xf32>
    %71 = arith.addf %67, %70 : vector<8x160xf32>
    %72 = vector.extract_strided_slice %71 {offsets = [0, 0], sizes = [8, 128], strides = [1, 1]} : vector<8x160xf32> to vector<8x128xf32>
    %cst_36 = arith.constant dense<0xFF800000> : vector<8xf32>
    %73 = vector.multi_reduction <maximumf>, %72, %cst_36 [1] : vector<8x128xf32> to vector<8xf32>
    %74 = vector.shape_cast %73 : vector<8xf32> to vector<8x1xf32>
    %75 = vector.broadcast %74 : vector<8x1xf32> to vector<8x128xf32>
    %76 = arith.subf %72, %75 : vector<8x128xf32>
    %77 = math.exp %76 : vector<8x128xf32>
    %cst_37 = arith.constant dense<0.000000e+00> : vector<8xf32>
    %78 = vector.multi_reduction <add>, %77, %cst_37 [1] : vector<8x128xf32> to vector<8xf32>
    %79 = vector.shape_cast %78 : vector<8xf32> to vector<8x1xf32>
    %cst_38 = arith.constant 1.000000e+00 : f32
    %80 = vector.broadcast %cst_38 : f32 to vector<8x1xf32>
    %81 = arith.divf %80, %79 : vector<8x1xf32>
    %82 = vector.broadcast %81 : vector<8x1xf32> to vector<8x128xf32>
    %83 = arith.mulf %77, %82 : vector<8x128xf32>
    %84 = arith.truncf %83 : vector<8x128xf32> to vector<8x128xbf16>
    %c2_39 = arith.constant 2 : index
    %c0_40 = arith.constant 0 : index
    %c0_41 = arith.constant 0 : index
    %85 = vector.load %arg6[%c2_39, %c0_40, %c0_41] : memref<4x8x128xbf16, #tpu.memory_space<vmem>>, vector<1x8x128xbf16>
    %86 = vector.shape_cast %85 : vector<1x8x128xbf16> to vector<8x128xbf16>
    %87 = vector.shape_cast %84 : vector<8x128xbf16> to vector<1x8x128xbf16>
    tpu.vector_store %arg6[%c2_39, %c0_40, %c0_41], %87 {strides = array<i32>} : memref<4x8x128xbf16, #tpu.memory_space<vmem>>, vector<1x8x128xbf16>,
    %c2_42 = arith.constant 2 : index
    %88 = memref.load %arg1[%c2_42] : memref<4xf32, #tpu.memory_space<smem>>
    %89 = vector.broadcast %88 : f32 to vector<8x128xf32>
    %90 = arith.mulf %89, %83 : vector<8x128xf32>
    %91 = arith.addf %60, %90 : vector<8x128xf32>
    %92 = vector.extract_strided_slice %71 {offsets = [0, 128], sizes = [8, 32], strides = [1, 1]} : vector<8x160xf32> to vector<8x32xf32>
    %cst_43 = arith.constant 0.000000e+00 : f32
    %93 = vector.broadcast %cst_43 : f32 to vector<8x32xf32>
    %94 = arith.maximumf %92, %93 : vector<8x32xf32>
    %95 = arith.truncf %94 : vector<8x32xf32> to vector<8x32xbf16>
    %c3 = arith.constant 3 : index
    %c0_44 = arith.constant 0 : index
    %c0_45 = arith.constant 0 : index
    %96 = vector.load %arg3[%c3, %c0_44, %c0_45] : memref<4x32x160xbf16, #tpu.memory_space<vmem>>, vector<1x32x160xbf16>
    %97 = vector.shape_cast %96 : vector<1x32x160xbf16> to vector<32x160xbf16>
    %cst_46 = arith.constant dense<0.000000e+00> : vector<8x160xf32>
    %98 = tpu.matmul %95, %97, %cst_46 {dimension_numbers = #tpu.dot_dimension_numbers<[1], [0], [0], [1], [0, 0, 1, 1], [], []>} : vector<8x32xbf16>, vector<32x160xbf16>, vector<8x160xf32> -> vector<8x160xf32>
    %c3_47 = arith.constant 3 : index
    %c0_48 = arith.constant 0 : index
    %c0_49 = arith.constant 0 : index
    %99 = vector.load %arg4[%c3_47, %c0_48, %c0_49] : memref<4x1x160xf32, #tpu.memory_space<vmem>>, vector<1x1x160xf32>
    %100 = vector.shape_cast %99 : vector<1x1x160xf32> to vector<1x160xf32>
    %101 = vector.broadcast %100 : vector<1x160xf32> to vector<8x160xf32>
    %102 = arith.addf %98, %101 : vector<8x160xf32>
    %103 = vector.extract_strided_slice %102 {offsets = [0, 0], sizes = [8, 128], strides = [1, 1]} : vector<8x160xf32> to vector<8x128xf32>
    %cst_50 = arith.constant dense<0xFF800000> : vector<8xf32>
    %104 = vector.multi_reduction <maximumf>, %103, %cst_50 [1] : vector<8x128xf32> to vector<8xf32>
    %105 = vector.shape_cast %104 : vector<8xf32> to vector<8x1xf32>
    %106 = vector.broadcast %105 : vector<8x1xf32> to vector<8x128xf32>
    %107 = arith.subf %103, %106 : vector<8x128xf32>
    %108 = math.exp %107 : vector<8x128xf32>
    %cst_51 = arith.constant dense<0.000000e+00> : vector<8xf32>
    %109 = vector.multi_reduction <add>, %108, %cst_51 [1] : vector<8x128xf32> to vector<8xf32>
    %110 = vector.shape_cast %109 : vector<8xf32> to vector<8x1xf32>
    %cst_52 = arith.constant 1.000000e+00 : f32
    %111 = vector.broadcast %cst_52 : f32 to vector<8x1xf32>
    %112 = arith.divf %111, %110 : vector<8x1xf32>
    %113 = vector.broadcast %112 : vector<8x1xf32> to vector<8x128xf32>
    %114 = arith.mulf %108, %113 : vector<8x128xf32>
    %115 = arith.truncf %114 : vector<8x128xf32> to vector<8x128xbf16>
    %c3_53 = arith.constant 3 : index
    %c0_54 = arith.constant 0 : index
    %c0_55 = arith.constant 0 : index
    %116 = vector.load %arg6[%c3_53, %c0_54, %c0_55] : memref<4x8x128xbf16, #tpu.memory_space<vmem>>, vector<1x8x128xbf16>
    %117 = vector.shape_cast %116 : vector<1x8x128xbf16> to vector<8x128xbf16>
    %118 = vector.shape_cast %115 : vector<8x128xbf16> to vector<1x8x128xbf16>
    tpu.vector_store %arg6[%c3_53, %c0_54, %c0_55], %118 {strides = array<i32>} : memref<4x8x128xbf16, #tpu.memory_space<vmem>>, vector<1x8x128xbf16>,
    %c3_56 = arith.constant 3 : index
    %119 = memref.load %arg1[%c3_56] : memref<4xf32, #tpu.memory_space<smem>>
    %120 = vector.broadcast %119 : f32 to vector<8x128xf32>
    %121 = arith.mulf %120, %114 : vector<8x128xf32>
    %122 = arith.addf %91, %121 : vector<8x128xf32>
    %c0_57 = arith.constant 0 : index
    %c0_58 = arith.constant 0 : index
    %123 = vector.load %arg5[%c0_57, %c0_58] : memref<8x128xf32, #tpu.memory_space<vmem>>, vector<8x128xf32>
    tpu.vector_store %arg5[%c0_57, %c0_58], %122 {strides = array<i32>} : memref<8x128xf32, #tpu.memory_space<vmem>>, vector<8x128xf32>,
    return
  }
  func.func @transform_0(%arg0: i32) -> i32 {
    %c0_i32 = arith.constant 0 : i32
    %c0_i32_0 = arith.constant 0 : i32
    return %c0_i32 : i32
  }
  func.func @transform_1(%arg0: i32) -> (i32, i32) {
    %c0_i32 = arith.constant 0 : i32
    %c0_i32_0 = arith.constant 0 : i32
    return %arg0, %c0_i32 : i32, i32
  }
  func.func @transform_2(%arg0: i32) -> (i32, i32, i32) {
    %c0_i32 = arith.constant 0 : i32
    %c0_i32_0 = arith.constant 0 : i32
    %c0_i32_1 = arith.constant 0 : i32
    %c0_i32_2 = arith.constant 0 : i32
    return %c0_i32, %c0_i32_0, %c0_i32_1 : i32, i32, i32
  }
  func.func @transform_3(%arg0: i32) -> (i32, i32, i32) {
    %c0_i32 = arith.constant 0 : i32
    %c0_i32_0 = arith.constant 0 : i32
    %c0_i32_1 = arith.constant 0 : i32
    %c0_i32_2 = arith.constant 0 : i32
    return %c0_i32, %c0_i32_0, %c0_i32_1 : i32, i32, i32
  }
  func.func @transform_4(%arg0: i32) -> (i32, i32) {
    %c0_i32 = arith.constant 0 : i32
    %c0_i32_0 = arith.constant 0 : i32
    return %arg0, %c0_i32 : i32, i32
  }
  func.func @transform_5(%arg0: i32) -> (i32, i32, i32) {
    %c0_i32 = arith.constant 0 : i32
    %c0_i32_0 = arith.constant 0 : i32
    %c0_i32_1 = arith.constant 0 : i32
    return %c0_i32, %arg0, %c0_i32_0 : i32, i32, i32
  }
}

</mosaic_0001>

<bundles_post_ra>
// kernel: tpu_custom_call.1
= control target key start
LH: loop header
LB: loop body
LE: loop exit
PB: predicated region body
PF: predicated region fallthrough
CT: control target
= control target key end

     0   :  { %11 = vsyncpa [#allocation5], 0  ;;  %s807_s0 = inlined_call_operand.hbm [shape: f32[4], index: 0, kind: input, shape index: {}]   ;;  %s808_s1 = inlined_call_operand.hbm [shape: f32[8,32], index: 1, kind: input, shape index: {}]   ;;  %s809_s2 = inlined_call_operand.hbm [shape: bf16[4,32,160], index: 2, kind: input, shape index: {}]   ;;  %s810_s3 = inlined_call_operand.vmem [shape: f32[4,1,160], index: 3, kind: input, shape index: {}]   ;;  %s811_s4 = inlined_call_operand.hbm [shape: f32[8,128], index: 4, kind: output, shape index: {0}]   ;;  %s812_s5 = inlined_call_operand.hbm [shape: bf16[4,8,128], index: 5, kind: output, shape index: {1}]  }
   0x1   :  { %12 = vsyncpa [#allocation3], 0 }
   0x2   :  { %13 = vsyncpa [#allocation8], 0 }
   0x3   :  { %14 = vsyncpa [#allocation4], 0 }
   0x4   :  { %15 = vsyncpa [#allocation11], 0  ;;  %s565_s20 = scalar_lea.hbm %s807_s0, 16 }
   0x5   :  { %p566_p0 = scmp.ne.s32.totalorder %s807_s0, %s565_s20  ;;  %p569_p1 = scmp.lt.u32.totalorder %s565_s20, %s807_s0 }
   0x7   :  { %p571_p2 = pnand %p569_p1, %p566_p0 }
   0x9   :  { %574 = shalt.err (!%p571_p2)
}
   0xa   :  { %s673_s25 = smov [#allocation2]   ;;  %s674_s28 = smov [#allocation6]  }
   0xb   :  { %23 = dma.hbm_to_smem %s807_s0, 16, %s673_s25, [#allocation5]  }
   0xc   :  { %s30_s29 = sshll.u32 %s674_s28, 4  ;;  %s675_s30 = smov [#allocation7]   ;;  %s31_s29 = int_to_ptr.vmem [resolvable:$true] %s30_s29 }
   0xd   :  { %s39_s6 = sshll.u32 %s675_s30, 4  ;;  %s575_s9 = scalar_lea.hbm %s808_s1, 128  ;;  %s40_s6 = int_to_ptr.vmem [resolvable:$true] %s39_s6 }
   0xe   :  { %p576_p3 = scmp.ne.s32.totalorder %s808_s1, %s575_s9  ;;  %p579_p4 = scmp.lt.u32.totalorder %s575_s9, %s808_s1 }
  0x10   :  { %p581_p5 = pnand %p579_p4, %p576_p3 }
  0x12   :  { %584 = shalt.err (!%p581_p5)
}
  0x13   :  { %s585_s0 = scalar_lea.vmem %s31_s29, 128  ;;  %p590_p7 = scmp.lt.s32.totalorder %s31_s29, %s31_s29 }
  0x14   :  { %p586_p6 = scmp.ne.s32.totalorder %s31_s29, %s585_s0  ;;  %p591_p8 = scmp.lt.s32.totalorder %s585_s0, %s585_s0 }
  0x16   :  { %p592_p9 = por %p591_p8, %p590_p7 }
  0x18   :  { %p593_p10 = pnand %p592_p9, %p586_p6 }
  0x1a   :  { %596 = shalt.err (!%p593_p10)
}
  0x1b   :  { %33 = dma.hbm_to_vmem [thread:$0]  %s808_s1, 128, %s31_s29, [#allocation3]  }
  0x1c   :  { %s597_s18 = scalar_lea.hbm %s809_s2, 2048 }
  0x1d   :  { %p598_p11 = scmp.ne.s32.totalorder %s809_s2, %s597_s18  ;;  %p601_p12 = scmp.lt.u32.totalorder %s597_s18, %s809_s2 }
  0x1f   :  { %p603_p13 = pnand %p601_p12, %p598_p11 }
  0x21   :  { %606 = shalt.err (!%p603_p13)
}
  0x22   :  { %s607_s23 = scalar_lea.vmem %s40_s6, 2048  ;;  %p612_p1 = scmp.lt.s32.totalorder %s40_s6, %s40_s6 }
  0x23   :  { %p608_p0 = scmp.ne.s32.totalorder %s40_s6, %s607_s23  ;;  %p613_p2 = scmp.lt.s32.totalorder %s607_s23, %s607_s23 }
  0x25   :  { %p614_p3 = por %p613_p2, %p612_p1 }
  0x27   :  { %p615_p4 = pnand %p614_p3, %p608_p0 }
  0x29   :  { %618 = shalt.err (!%p615_p4)
}
  0x2a   :  { %s676_s1 = smov 128   ;;  %s677_s24 = smov 8  }
  0x2b   :  { %45 = dma.hbm_to_vmem [thread:$0]  %s809_s2, 2048, %s40_s6, [#allocation8], %s676_s1, %s676_s1, %s677_s24  }
  0x2c   :  { %663 = dma.done.wait [#allocation5], 16  }
  0x2d   :  { %664 = vsyncadd [#allocation5], 4294967280 }
  0x2e   :  { %665 = dma.done.wait [#allocation3], 128  }
  0x2f   :  { %666 = vsyncadd [#allocation3], 4294967168 }
  0x30   :  { %667 = dma.done.wait [#allocation8], 2048  }
  0x31   :  { %668 = vsyncadd [#allocation8], 4294965248 }
  0x32   :  { %57 = sfence }
  0x33   :  { %v525_v0 = vld [vmem:[#allocation7 + $0x4] ss:$8 sps:$4 sm:$0xff]   ;;  %v527_v1 = vld [vmem:[#allocation7] ss:$8 sps:$4 sm:$0xff]   ;;  %v678_v2 = vmov 0   ;;  %v59_v5 = vld [vmem:[#allocation6] sm:$0xff]  ;;  %v67_v11 = vlaneseq }
  0x34   :  { %133 = vmatprep.mubr.bf16.mxu0 %v678_v2  ;;  %233 = vmatprep.mubr.bf16.mxu1 %v678_v2  ;;  %v528_v3 = vld [vmem:[#allocation7 + $0x14] ss:$8 sps:$4 sm:$0xff]   ;;  %v530_v4 = vld [vmem:[#allocation7 + $0x10] ss:$8 sps:$4 sm:$0xff]   ;;  %v60_v6 = vpack.c.bf16 %v59_v5, %v59_v5  ;;  %vm97_vm0 = vcmask 261120   ;;  %s500_s9 = sld [smem:[#allocation2 + $0x1]] }
  0x35   :  { %101 = vmatprep.subr.bf16.mxu0 %v525_v0  ;;  %v531_v7 = vld [vmem:[#allocation7 + $0x24] ss:$8 sps:$4 sm:$0xff]   ;;  %v533_v8 = vld [vmem:[#allocation7 + $0x20] ss:$8 sps:$4 sm:$0xff]   ;;  %v534_v9 = vld [vmem:[#allocation7 + $0x34] ss:$8 sps:$4 sm:$0xff]  }
  0x36   :  { %102 = vmatpush1.bf16.msra.mxu0 %v527_v1  ;;  %201 = vmatprep.subr.bf16.mxu1 %v531_v7  ;;  %v536_v10 = vld [vmem:[#allocation7 + $0x30] ss:$8 sps:$4 sm:$0xff]   ;;  %v68_v12 = vshrl.u32 %v67_v11, 7  ;;  %v537_v26 = vld [vmem:[#allocation7 + $0x40] ss:$8 sps:$4 sm:$0xff]   ;;  %s507_s10 = sld [smem:[#allocation2 + $0x2]] }
  0x37   :  { %103 = vmatprep.subr.bf16.mxu0 %v528_v3  ;;  %202 = vmatpush1.bf16.msra.mxu1 %v533_v8  ;;  %v65_v14 = vld [vmem:[%s810_s3] sm:$0x3]  ;;  %v539_v27 = vld [vmem:[#allocation7 + $0x44] ss:$8 sps:$4 sm:$0xff]   ;;  %v542_v28 = vld [vmem:[#allocation7 + $0x54] ss:$8 sps:$4 sm:$0xff]  }
  0x38   :  { %203 = vmatprep.subr.bf16.mxu1 %v534_v9  ;;  %v750_v13 = vsub.s32 0, %v68_v12  ;;  %v755_v15 = vsub.s32 1, %v68_v12  ;;  %v540_v29 = vld [vmem:[#allocation7 + $0x50] ss:$8 sps:$4 sm:$0xff]   ;;  %v543_v45 = vld [vmem:[#allocation7 + $0x60] ss:$8 sps:$4 sm:$0xff]  }
  0x39   :  { %v494_v33 = vld [vmem:[%s810_s3 + $0x2] sm:$0x3]  ;;  %v545_v46 = vld [vmem:[#allocation7 + $0x64] ss:$8 sps:$4 sm:$0xff]   ;;  %v548_v47 = vld [vmem:[#allocation7 + $0x74] ss:$8 sps:$4 sm:$0xff]  }
  0x3a   :  { %104 = vmatpush1.bf16.msra.mxu0 %v530_v4  ;;  %v70_v16 = vrot.slane %v65_v14, %v750_v13  ;;  %v74_v17 = vrot.slane %v65_v14, %v755_v15  ;;  %v171_v34 = vrot.slane %v494_v33, %v750_v13  ;;  %v175_v35 = vrot.slane %v494_v33, %v755_v15  ;;  %v546_v48 = vld [vmem:[#allocation7 + $0x70] ss:$8 sps:$4 sm:$0xff]   ;;  %v501_v54 = vld [vmem:[%s810_s3 + $0x4] sm:$0x3]  ;;  %v508_v7 = vld [vmem:[%s810_s3 + $0x6] sm:$0x3] }
  0x3b   :  { %204 = vmatpush1.bf16.msra.mxu1 %v536_v10  ;;  %302 = vmatprep.subr.bf16.mxu0 %v539_v27  ;;  %v272_v55 = vrot.slane %v501_v54, %v750_v13  ;;  %v276_v56 = vrot.slane %v501_v54, %v755_v15  ;;  %v373_v8 = vrot.slane %v508_v7, %v750_v13  ;;  %s154_s3 = sld [smem:[#allocation2]]  ;;  %s514_s11 = sld [smem:[#allocation2 + $0x3]] }
  0x3c   :  { %398 = vmatprep.subr.bf16.mxu1 %v545_v46  ;;  %s679_s12 = smov [#allocation10]   ;;  %s680_s0 = smov [#allocation9]  }
  0x3d   :  { %493 = vmatmul.mubr.msk.bf16.vlgmr.msra.gmra.mrb[0].mxu0 %vm97_vm0, %v60_v6  ;;  %s471_s13 = sshll.u32 %s679_s12, 4  ;;  %s462_s14 = sshll.u32 %s680_s0, 4  ;;  %s472_s13 = int_to_ptr.vmem [resolvable:$true] %s471_s13  ;;  %s776_s14 = int_to_ptr.vmem [resolvable:$true] %s462_s14 }
  0x3e   :  { %334 = vmatprep.mubr.bf16.mxu0 %v678_v2  ;;  %303 = vmatpush1.bf16.msra.mxu0 %v537_v26  ;;  %v256_v26 = vstv %s500_s9  ;;  %s619_s15 = scalar_lea.vmem %s472_s13, 256  ;;  %p624_p6 = scmp.lt.s32.totalorder %s472_s13, %s472_s13 }
  0x3f   :  { %304 = vmatprep.subr.bf16.mxu0 %v542_v28  ;;  %v357_v28 = vstv %s507_s10  ;;  %p620_p5 = scmp.ne.s32.totalorder %s472_s13, %s619_s15  ;;  %p625_p7 = scmp.lt.s32.totalorder %s619_s15, %s619_s15 }
  0x41   :  { %p626_p8 = por %p625_p7, %p624_p6 }
  0x42   :  { %305 = vmatpush1.bf16.msra.mxu0 %v540_v29 }
  0x43   :  { %p627_p9 = pnand %p626_p8, %p620_p5 }
 0x110   :  { %v135_v18 = vpop.f32.mrb[0].mxu0 }
 0x111   :  { %v136_v19 = vadd.f32 %v135_v18, %v70_v16  ;;  %v137_v20 = vpop.f32.mrb[1].mxu0 }
 0x112   :  { %v138_v21 = vadd.f32 %v137_v20, %v74_v17  ;;  %v139_v22 = vpop.f32.mrb[2].mxu0 }
 0x113   :  { %v140_v23 = vpop.f32.mrb[3].mxu0  ;;  %142 = vmax.xlane.f32.xlu0 %v136_v19 }
 0x114   :  { %v158_v24 = vmax.f32 %v138_v21, 0.0 }
 0x116   :  { %v159_v25 = vpack.c.bf16 %v158_v24, %v158_v24 }
 0x118   :  { %499 = vmatmul.mubr.msk.bf16.vlgmr.msra.gmra.mrb[0].mxu1 %vm97_vm0, %v159_v25  ;;  %v155_v25 = vstv %s154_s3 }
 0x119   :  { %430 = vmatprep.mubr.bf16.mxu1 %v678_v2  ;;  %399 = vmatpush1.bf16.msra.mxu1 %v543_v45 }
 0x11a   :  { %400 = vmatprep.subr.bf16.mxu1 %v548_v47 }
 0x11d   :  { %401 = vmatpush1.bf16.msra.mxu1 %v546_v48 }
 0x1a0   :  { %v143_v30 = vpop.xlane.xlu0 %142 }
 0x1a1   :  { %v144_v31 = vsub.f32 %v136_v19, %v143_v30 }
 0x1a3   :  { %v145_v32 = vmul.f32 1.442695, %v144_v31 }
 0x1a5   :  { %549 = vpow2.f32 %v145_v32 }
 0x1af   :  { %v550_v43 = vpop.eup %549 }
 0x1eb   :  { %v235_v36 = vpop.f32.mrb[0].mxu1 }
 0x1ec   :  { %v236_v37 = vadd.f32 %v235_v36, %v171_v34  ;;  %v237_v38 = vpop.f32.mrb[1].mxu1 }
 0x1ed   :  { %v238_v39 = vadd.f32 %v237_v38, %v175_v35  ;;  %v239_v40 = vpop.f32.mrb[2].mxu1 }
 0x1ee   :  { %v240_v41 = vpop.f32.mrb[3].mxu1  ;;  %242 = vmax.xlane.f32.xlu0 %v236_v37 }
 0x1ef   :  { %v259_v42 = vmax.f32 %v238_v39, 0.0 }
 0x1f1   :  { %v260_v44 = vpack.c.bf16 %v259_v42, %v259_v42 }
 0x1f2   :  { %147 = vadd.xlane.f32.xlu0 %v550_v43 }
 0x1f3   :  { %506 = vmatmul.mubr.msk.bf16.vlgmr.msra.gmra.mrb[4].mxu0 %vm97_vm0, %v260_v44 }
 0x27b   :  { %v243_v49 = vpop.xlane.xlu0 %242 }
 0x27c   :  { %v244_v5 = vsub.f32 %v236_v37, %v243_v49  ;;  %v452_v37 = vstv %s514_s11 }
 0x27e   :  { %v245_v6 = vmul.f32 1.442695, %v244_v5 }
 0x27f   :  { %v148_v50 = vpop.xlane.xlu0 %147 }
 0x280   :  { %551 = vrcp.f32 %v148_v50 }
 0x28a   :  { %v552_v51 = vpop.eup %551 }
 0x28b   :  { %v151_v52 = vmul.f32 %v552_v51, %v550_v43 }
 0x28d   :  { %v152_v53 = vpack.c.bf16 %v151_v52, %v151_v52  ;;  %v156_v29 = vmul.f32 %v155_v25, %v151_v52 }
 0x28f   :  { %153 = vst [vmem:[#allocation10] sm:$0xf] %v152_v53 }
 0x2c6   :  { %v336_v57 = vpop.f32.mrb[4].mxu0 }
 0x2c7   :  { %v337_v58 = vadd.f32 %v336_v57, %v272_v55  ;;  %v338_v59 = vpop.f32.mrb[5].mxu0 }
 0x2c8   :  { %v339_v60 = vadd.f32 %v338_v59, %v276_v56  ;;  %v340_v61 = vpop.f32.mrb[6].mxu0 }
 0x2c9   :  { %v341_v62 = vpop.f32.mrb[7].mxu0  ;;  %343 = vmax.xlane.f32.xlu1 %v337_v58 }
 0x2ca   :  { %v360_v63 = vmax.f32 %v339_v60, 0.0 }
 0x2cc   :  { %v361_v0 = vpack.c.bf16 %v360_v63, %v360_v63 }
 0x2ce   :  { %513 = vmatmul.mubr.msk.bf16.vlgmr.msra.gmra.mrb[4].mxu1 %vm97_vm0, %v361_v0 }
 0x356   :  { %v344_v1 = vpop.xlane.xlu1 %343 }
 0x357   :  { %v345_v2 = vsub.f32 %v337_v58, %v344_v1 }
 0x359   :  { %v346_v3 = vmul.f32 1.442695, %v345_v2 }
 0x35b   :  { %553 = vpow2.f32 %v346_v3 }
 0x35c   :  { %555 = vpow2.f32 %v245_v6 }
 0x365   :  { %v554_v4 = vpop.eup %553 }
 0x366   :  { %348 = vadd.xlane.f32.xlu0 %v554_v4  ;;  %v556_v15 = vpop.eup %555 }
 0x3a1   :  { %v432_v9 = vpop.f32.mrb[4].mxu1 }
 0x3a2   :  { %v433_v10 = vadd.f32 %v432_v9, %v373_v8  ;;  %v434_v11 = vpop.f32.mrb[5].mxu1 }
 0x3a3   :  { %v435_v12 = vpop.f32.mrb[6].mxu1 }
 0x3a4   :  { %v436_v14 = vpop.f32.mrb[7].mxu1  ;;  %438 = vmax.xlane.f32.xlu1 %v433_v10 }
 0x3a8   :  { %247 = vadd.xlane.f32.xlu1 %v556_v15 }
 0x3f3   :  { %v349_v16 = vpop.xlane.xlu0 %348 }
 0x3f4   :  { %557 = vrcp.f32 %v349_v16 }
 0x3fe   :  { %v558_v17 = vpop.eup %557 }
 0x3ff   :  { %v352_v18 = vmul.f32 %v558_v17, %v554_v4 }
 0x401   :  { %v353_v19 = vpack.c.bf16 %v352_v18, %v352_v18  ;;  %v358_v33 = vmul.f32 %v357_v28, %v352_v18 }
 0x403   :  { %355 = vst [vmem:[#allocation10 + $0x8] sm:$0xf] %v353_v19 }
 0x431   :  { %v439_v20 = vpop.xlane.xlu1 %438 }
 0x432   :  { %v440_v21 = vsub.f32 %v433_v10, %v439_v20 }
 0x434   :  { %v441_v22 = vmul.f32 1.442695, %v440_v21 }
 0x435   :  { %v248_v23 = vpop.xlane.xlu1 %247 }
 0x436   :  { %559 = vpow2.f32 %v441_v22 }
 0x437   :  { %561 = vrcp.f32 %v248_v23 }
 0x440   :  { %v560_v13 = vpop.eup %559 }
 0x441   :  { %v562_v24 = vpop.eup %561  ;;  %443 = vadd.xlane.f32.xlu1 %v560_v13 }
 0x442   :  { %v251_v27 = vmul.f32 %v562_v24, %v556_v15 }
 0x444   :  { %v252_v30 = vpack.c.bf16 %v251_v27, %v251_v27  ;;  %v257_v31 = vmul.f32 %v256_v26, %v251_v27 }
 0x446   :  { %254 = vst [vmem:[#allocation10 + $0x4] sm:$0xf] %v252_v30  ;;  %v258_v32 = vadd.f32 %v257_v31, %v156_v29 }
 0x448   :  { %v359_v34 = vadd.f32 %v358_v33, %v258_v32 }
 0x4ce   :  { %v444_v35 = vpop.xlane.xlu1 %443 }
 0x4cf   :  { %563 = vrcp.f32 %v444_v35 }
 0x4d9   :  { %v564_v36 = vpop.eup %563 }
 0x4da   :  { %v447_v38 = vmul.f32 %v564_v36, %v560_v13 }
 0x4dc   :  { %v448_v39 = vpack.c.bf16 %v447_v38, %v447_v38  ;;  %v453_v40 = vmul.f32 %v452_v37, %v447_v38 }
 0x4de   :  { %450 = vst [vmem:[#allocation10 + $0xc] sm:$0xf] %v448_v39  ;;  %v454_v41 = vadd.f32 %v453_v40, %v359_v34 }
 0x4df   :  { %630 = shalt.err (!%p627_p9)
}
 0x4e0   :  { %s631_s18 = scalar_lea.hbm %s812_s5, 256 }
 0x4e1   :  { %p632_p10 = scmp.ne.s32.totalorder %s812_s5, %s631_s18  ;;  %p635_p11 = scmp.lt.u32.totalorder %s631_s18, %s812_s5 }
 0x4e3   :  { %p637_p12 = pnand %p635_p11, %p632_p10 }
 0x4e5   :  { %640 = shalt.err (!%p637_p12)
}
 0x4e6   :  { %s681_s23 = smov 64   ;;  %s682_s1 = smov 4   ;;  %455 = vst [vmem:[#allocation9] sm:$0xff] %v454_v41 }
 0x4e7   :  { %477 = dma.vmem_to_hbm [thread:$0]  %s472_s13, 256, %s812_s5, [#allocation11], %s681_s23, %s681_s23, %s682_s1  }
 0x4e8   :  { %s641_s26 = scalar_lea.vmem %s776_s14, 128  ;;  %p646_p0 = scmp.lt.s32.totalorder %s776_s14, %s776_s14 }
 0x4e9   :  { %p642_p13 = scmp.ne.s32.totalorder %s776_s14, %s641_s26  ;;  %p647_p1 = scmp.lt.s32.totalorder %s641_s26, %s641_s26 }
 0x4eb   :  { %p648_p2 = por %p647_p1, %p646_p0 }
 0x4ed   :  { %p649_p3 = pnand %p648_p2, %p642_p13 }
 0x4ef   :  { %652 = shalt.err (!%p649_p3)
}
 0x4f0   :  { %s653_s28 = scalar_lea.hbm %s811_s4, 128 }
 0x4f1   :  { %p654_p4 = scmp.ne.s32.totalorder %s811_s4, %s653_s28  ;;  %p657_p5 = scmp.lt.u32.totalorder %s653_s28, %s811_s4 }
 0x4f3   :  { %p659_p6 = pnand %p657_p5, %p654_p4 }
 0x4f5   :  { %662 = shalt.err (!%p659_p6)
}
 0x4f6   :  { %465 = dma.vmem_to_hbm [thread:$0]  %s776_s14, 128, %s811_s4, [#allocation4]  }
 0x4f7   :  { %669 = dma.done.wait [#allocation4], 128  }
 0x4f8   :  { %670 = vsyncadd [#allocation4], 4294967168 }
 0x4f9   :  { %671 = dma.done.wait [#allocation11], 256  }
 0x4fa   :  { %672 = vsyncadd [#allocation11], 4294967040 }
 0x4fb   :  { %484 = vsyncpa [#allocation3], 1 }
 0x4fc   :  { %485 = vsyncpa [#allocation8], 1 }
 0x4fd   :  { %486 = vsyncpa [#allocation4], 1 }
 0x4fe   :  { %487 = vsyncpa [#allocation11], 1 }
 0x4ff   :  { %488 = vsyncpa [#allocation5], 1 }

</bundles_post_ra>
